<compile_context>
chip_gen: v7x
topology: tpu7x:2x2x1
jax: 0.10.0
libtpu: 0.0.40
codegen_flags: <defaults>
</compile_context>

<pallas_src>
import jax
import jax.numpy as jnp
from jax import lax
from jax.experimental import pallas as pl
from jax.experimental.pallas import tpu as pltpu


def _fhm_block(x, wf, bf, wt, b):
    """Core math for one module invocation.

    x:  (B, F) f32
    wf: (F, F) = W^T @ R   (fused first-linear + rand_weight matmul)
    bf: (1, F) = b @ R + 1
    wt: (F, F) = W^T
    b:  (1, F)
    Returns (B, 1) f32 whose total sum is the module's scalar output.
    """
    # relu((x @ W^T + b) @ R + 1)  ==  relu(x @ wf + bf)   -- one MXU pass saved
    h = jnp.maximum(jnp.dot(x, wf, preferred_element_type=jnp.float32) + bf, 0.0)
    # second application of the shared linear layer
    h = jnp.dot(h, wt, preferred_element_type=jnp.float32) + b

    # while X.abs().sum() > 1: X /= 2 ; return X.sum()
    # Halving is exact for normal f32 (> 1), so the loop count has the closed
    # form  k = max(e + (mant != 0), 0)  where abs_sum = 1.mant * 2^e.
    row_s = jnp.sum(h, axis=-1, keepdims=True)        # (B, 1) per-row sums
    a = jnp.sum(jnp.abs(h), keepdims=True)            # (1, 1) abs-sum >= 0

    bits = pltpu.bitcast(a, jnp.int32)                # exponent-bit math, int32 vregs
    e = ((bits >> 23) & 0xFF) - 127
    k = jnp.maximum(e + ((bits & 0x7FFFFF) != 0).astype(jnp.int32), 0)

    # Build 2^-k exactly from exponent bits (no log2/exp2).  Two factors so
    # each stays a normal f32 even when k reaches 128.
    k_lo = jnp.minimum(k, 64)
    k_hi = k - k_lo
    scale = (pltpu.bitcast((127 - k_lo) << 23, jnp.float32) *
             pltpu.bitcast((127 - k_hi) << 23, jnp.float32))  # (1, 1) == 2^-k

    return row_s * scale                               # (B, 1)


def _fhm_kernel(x_ref, w_ref, b_ref, out_ref):
    """Single-invocation kernel: scalar out through SMEM."""
    scaled = _fhm_block(x_ref[...], w_ref[0], b_ref[0], w_ref[1], b_ref[1])
    out_ref[0] = jnp.sum(scaled)                       # only reduce left: (B,1) -> scalar


def _fhm_batched_kernel(x_ref, w_ref, b_ref, out_ref):
    """Per-grid-step kernel: one module invocation per step, weights resident."""
    scaled = _fhm_block(x_ref[0], w_ref[0], b_ref[0], w_ref[1], b_ref[1])
    out_ref[...] = jnp.sum(scaled, keepdims=True).reshape(1, 1, 1)


def prepare_params(linear_w, linear_b, rand_weight):
    """One-time preprocessing, hoisted out of the per-call hot path.

    linear_w: (F, F) torch (out, in) convention; linear_b: (F,); rand_weight: (F, F).
    Returns stacked weights (2, F, F) and stacked biases (2, 1, F).
    """
    f32 = jnp.float32
    wt = jnp.asarray(linear_w, f32).T                  # (in, out)
    b = jnp.asarray(linear_b, f32).reshape(1, -1)      # (1, F)
    rw = jnp.asarray(rand_weight, f32)
    w_fused = wt @ rw                                  # W^T @ R
    b_fused = b @ rw + 1.0                             # b @ R + 1
    w_stack = jnp.stack([w_fused, wt], axis=0)         # (2, F, F)
    b_stack = jnp.stack([b_fused, b], axis=0)          # (2, 1, F)
    return w_stack, b_stack


@jax.jit
def fixed_hidden_mlp(x, w_stack, b_stack):
    """Single module forward.  x: (B, F) f32.  Returns scalar f32."""
    B, F = x.shape
    out = pl.pallas_call(
        _fhm_kernel,
        out_shape=jax.ShapeDtypeStruct((1,), jnp.float32),
        in_specs=[
            pl.BlockSpec((B, F), lambda: (0, 0)),
            pl.BlockSpec((2, F, F), lambda: (0, 0, 0)),
            pl.BlockSpec((2, 1, F), lambda: (0, 0, 0)),
        ],
        out_specs=pl.BlockSpec(memory_space=pltpu.MemorySpace.SMEM),
    )(x, w_stack, b_stack)
    return out[0]


@jax.jit
def fixed_hidden_mlp_batched(xs, w_stack, b_stack):
    """N independent module forwards in one pallas_call.

    xs: (N, B, F) f32.  Returns (N,) f32.  Weights stay VMEM-resident across
    the grid; the grid axis is "parallel" so v7x shards it over both TCs.
    """
    N, B, F = xs.shape
    out = pl.pallas_call(
        _fhm_batched_kernel,
        out_shape=jax.ShapeDtypeStruct((N, 1, 1), jnp.float32),
        grid=(N,),
        in_specs=[
            pl.BlockSpec((1, B, F), lambda i: (i, 0, 0)),
            pl.BlockSpec((2, F, F), lambda i: (0, 0, 0)),   # resident
            pl.BlockSpec((2, 1, F), lambda i: (0, 0, 0)),   # resident
        ],
        out_specs=pl.BlockSpec((1, 1, 1), lambda i: (i, 0, 0)),
        compiler_params=pltpu.CompilerParams(dimension_semantics=("parallel",)),
    )(xs, w_stack, b_stack)
    return out.reshape(N)


def reference(x, linear_w, linear_b, rand_weight):
    """Pure-JAX reference matching the PyTorch module (unfused, real loop)."""
    h = x @ linear_w.T + linear_b
    h = jnp.maximum(h @ rand_weight + 1.0, 0.0)
    h = h @ linear_w.T + linear_b

    def cond(hh):
        return jnp.sum(jnp.abs(hh)) > 1.0

    def body(hh):
        return hh * 0.5

    h = lax.while_loop(cond, body, h)
    return jnp.sum(h)


if __name__ == "__main__":
    key = jax.random.PRNGKey(0)
    k_x, k_rw, k_w, k_b, k_xs = jax.random.split(key, 5)

    B, F = 2, 20
    # X = torch.rand(2, 20)  -> uniform [0, 1)
    x = jax.random.uniform(k_x, (B, F), dtype=jnp.float32)
    # self.rand_weight = torch.rand((20, 20))
    rand_weight = jax.random.uniform(k_rw, (F, F), dtype=jnp.float32)
    # nn.Linear(20, 20): weight/bias ~ U(-1/sqrt(20), 1/sqrt(20))
    bound = 1.0 / (F ** 0.5)
    linear_w = jax.random.uniform(k_w, (F, F), dtype=jnp.float32,
                                  minval=-bound, maxval=bound)
    linear_b = jax.random.uniform(k_b, (F,), dtype=jnp.float32,
                                  minval=-bound, maxval=bound)

    # One-time param prep (transpose / cast / matmul fusion / operand stacking).
    w_stack, b_stack = prepare_params(linear_w, linear_b, rand_weight)

    # Single forward (the module's actual interface).
    out = jax.block_until_ready(fixed_hidden_mlp(x, w_stack, b_stack))
    ref = jax.block_until_ready(reference(x, linear_w, linear_b, rand_weight))
    assert jnp.allclose(out, ref, rtol=1e-5, atol=1e-5), (out, ref)

    # Batched path: N independent invocations amortized over one grid.
    N = 8
    xs = jax.random.uniform(k_xs, (N, B, F), dtype=jnp.float32)
    outs = jax.block_until_ready(fixed_hidden_mlp_batched(xs, w_stack, b_stack))
    refs = jnp.stack([reference(xs[i], linear_w, linear_b, rand_weight)
                      for i in range(N)])
    assert jnp.allclose(outs, refs, rtol=1e-5, atol=1e-5), (outs, refs)

    print("KERNEL_OK")
</pallas_src>

<mosaic_0001>
module attributes {stable_mosaic.version = 11 : i64} {
  func.func @_fhm_kernel(%arg0: memref<2x20xf32, #tpu.memory_space<vmem>>, %arg1: memref<2x20x20xf32, #tpu.memory_space<vmem>>, %arg2: memref<2x1x20xf32, #tpu.memory_space<vmem>>, %arg3: memref<1xf32, #tpu.memory_space<smem>>) attributes {dimension_semantics = [], scalar_prefetch = 0 : i64, scratch_operands = 0 : i64, tpu.core_type = #tpu.core_type<tc>} {
    %c0 = arith.constant 0 : index
    %c0_0 = arith.constant 0 : index
    %0 = vector.load %arg0[%c0, %c0_0] : memref<2x20xf32, #tpu.memory_space<vmem>>, vector<2x20xf32>
    %c0_1 = arith.constant 0 : index
    %c0_2 = arith.constant 0 : index
    %c0_3 = arith.constant 0 : index
    %1 = vector.load %arg1[%c0_1, %c0_2, %c0_3] : memref<2x20x20xf32, #tpu.memory_space<vmem>>, vector<1x20x20xf32>
    %2 = vector.shape_cast %1 : vector<1x20x20xf32> to vector<20x20xf32>
    %c0_4 = arith.constant 0 : index
    %c0_5 = arith.constant 0 : index
    %c0_6 = arith.constant 0 : index
    %3 = vector.load %arg2[%c0_4, %c0_5, %c0_6] : memref<2x1x20xf32, #tpu.memory_space<vmem>>, vector<1x1x20xf32>
    %4 = vector.shape_cast %3 : vector<1x1x20xf32> to vector<1x20xf32>
    %c1 = arith.constant 1 : index
    %c0_7 = arith.constant 0 : index
    %c0_8 = arith.constant 0 : index
    %5 = vector.load %arg1[%c1, %c0_7, %c0_8] : memref<2x20x20xf32, #tpu.memory_space<vmem>>, vector<1x20x20xf32>
    %6 = vector.shape_cast %5 : vector<1x20x20xf32> to vector<20x20xf32>
    %c1_9 = arith.constant 1 : index
    %c0_10 = arith.constant 0 : index
    %c0_11 = arith.constant 0 : index
    %7 = vector.load %arg2[%c1_9, %c0_10, %c0_11] : memref<2x1x20xf32, #tpu.memory_space<vmem>>, vector<1x1x20xf32>
    %8 = vector.shape_cast %7 : vector<1x1x20xf32> to vector<1x20xf32>
    %cst = arith.constant dense<0.000000e+00> : vector<2x20xf32>
    %9 = tpu.matmul %0, %2, %cst {dimension_numbers = #tpu.dot_dimension_numbers<[1], [0], [0], [1], [0, 0, 1, 1], [], []>} : vector<2x20xf32>, vector<20x20xf32>, vector<2x20xf32> -> vector<2x20xf32>
    %10 = vector.broadcast %4 : vector<1x20xf32> to vector<2x20xf32>
    %11 = arith.addf %9, %10 : vector<2x20xf32>
    %cst_12 = arith.constant 0.000000e+00 : f32
    %12 = vector.broadcast %cst_12 : f32 to vector<2x20xf32>
    %13 = arith.maximumf %11, %12 : vector<2x20xf32>
    %cst_13 = arith.constant dense<0.000000e+00> : vector<2x20xf32>
    %14 = tpu.matmul %13, %6, %cst_13 {dimension_numbers = #tpu.dot_dimension_numbers<[1], [0], [0], [1], [0, 0, 1, 1], [], []>} : vector<2x20xf32>, vector<20x20xf32>, vector<2x20xf32> -> vector<2x20xf32>
    %15 = vector.broadcast %8 : vector<1x20xf32> to vector<2x20xf32>
    %16 = arith.addf %14, %15 : vector<2x20xf32>
    %cst_14 = arith.constant dense<0.000000e+00> : vector<2xf32>
    %17 = vector.multi_reduction <add>, %16, %cst_14 [1] : vector<2x20xf32> to vector<2xf32>
    %18 = vector.shape_cast %17 : vector<2xf32> to vector<2x1xf32>
    %19 = math.absf %16 : vector<2x20xf32>
    %20 = vector.shape_cast %19 : vector<2x20xf32> to vector<1x2x20xf32>
    %cst_15 = arith.constant dense<0.000000e+00> : vector<1xf32>
    %21 = vector.multi_reduction <add>, %20, %cst_15 [1, 2] : vector<1x2x20xf32> to vector<1xf32>
    %22 = vector.shape_cast %21 : vector<1xf32> to vector<1x1x1xf32>
    %23 = vector.extract %22[0, 0, 0] : f32 from vector<1x1x1xf32>
    %24 = vector.broadcast %23 : f32 to vector<1x1xf32>
    %25 = tpu.bitcast %24 : vector<1x1xf32> -> vector<1x1xi32>
    %c23_i32 = arith.constant 23 : i32
    %26 = vector.broadcast %c23_i32 : i32 to vector<1x1xi32>
    %27 = arith.shrsi %25, %26 : vector<1x1xi32>
    %c255_i32 = arith.constant 255 : i32
    %28 = vector.broadcast %c255_i32 : i32 to vector<1x1xi32>
    %29 = arith.andi %27, %28 : vector<1x1xi32>
    %c127_i32 = arith.constant 127 : i32
    %30 = vector.broadcast %c127_i32 : i32 to vector<1x1xi32>
    %31 = arith.subi %29, %30 : vector<1x1xi32>
    %c8388607_i32 = arith.constant 8388607 : i32
    %32 = vector.broadcast %c8388607_i32 : i32 to vector<1x1xi32>
    %33 = arith.andi %25, %32 : vector<1x1xi32>
    %c0_i32 = arith.constant 0 : i32
    %34 = vector.broadcast %c0_i32 : i32 to vector<1x1xi32>
    %35 = arith.cmpi ne, %33, %34 : vector<1x1xi32>
    %36 = arith.extui %35 : vector<1x1xi1> to vector<1x1xi32>
    %37 = arith.addi %31, %36 : vector<1x1xi32>
    %c0_i32_16 = arith.constant 0 : i32
    %38 = vector.broadcast %c0_i32_16 : i32 to vector<1x1xi32>
    %39 = arith.maxsi %37, %38 : vector<1x1xi32>
    %c64_i32 = arith.constant 64 : i32
    %40 = vector.broadcast %c64_i32 : i32 to vector<1x1xi32>
    %41 = arith.minsi %39, %40 : vector<1x1xi32>
    %42 = arith.subi %39, %41 : vector<1x1xi32>
    %c127_i32_17 = arith.constant 127 : i32
    %43 = vector.broadcast %c127_i32_17 : i32 to vector<1x1xi32>
    %44 = arith.subi %43, %41 : vector<1x1xi32>
    %c23_i32_18 = arith.constant 23 : i32
    %45 = vector.broadcast %c23_i32_18 : i32 to vector<1x1xi32>
    %46 = arith.shli %44, %45 : vector<1x1xi32>
    %47 = tpu.bitcast %46 : vector<1x1xi32> -> vector<1x1xf32>
    %c127_i32_19 = arith.constant 127 : i32
    %48 = vector.broadcast %c127_i32_19 : i32 to vector<1x1xi32>
    %49 = arith.subi %48, %42 : vector<1x1xi32>
    %c23_i32_20 = arith.constant 23 : i32
    %50 = vector.broadcast %c23_i32_20 : i32 to vector<1x1xi32>
    %51 = arith.shli %49, %50 : vector<1x1xi32>
    %52 = tpu.bitcast %51 : vector<1x1xi32> -> vector<1x1xf32>
    %53 = arith.mulf %47, %52 : vector<1x1xf32>
    %54 = vector.broadcast %53 : vector<1x1xf32> to vector<2x1xf32>
    %55 = arith.mulf %18, %54 : vector<2x1xf32>
    %56 = vector.shape_cast %55 : vector<2x1xf32> to vector<1x2x1xf32>
    %cst_21 = arith.constant dense<0.000000e+00> : vector<1xf32>
    %57 = vector.multi_reduction <add>, %56, %cst_21 [1, 2] : vector<1x2x1xf32> to vector<1xf32>
    %58 = vector.shape_cast %57 : vector<1xf32> to vector<1x1x1xf32>
    %59 = vector.extract %58[0, 0, 0] : f32 from vector<1x1x1xf32>
    %c0_22 = arith.constant 0 : index
    %60 = memref.load %arg3[%c0_22] : memref<1xf32, #tpu.memory_space<smem>>
    memref.store %59, %arg3[%c0_22] : memref<1xf32, #tpu.memory_space<smem>>
    return
  }
}

</mosaic_0001>

<bundles_post_ra>
// kernel: fixed_hidden_mlp.1
= control target key start
LH: loop header
LB: loop body
LE: loop exit
PB: predicated region body
PF: predicated region fallthrough
CT: control target
= control target key end

     0   :  { %v320_v2 = vmov 0.0|0.0   ;;  %vm321_vm0 = vmmov 0   ;;  %v322_v4 = vmov 0.0   ;;  %s384_s0 = inlined_call_operand.vmem [shape: f32[2,20], index: 0, kind: input, shape index: {}]   ;;  %s385_s1 = inlined_call_operand.vmem [shape: f32[2,20,20], index: 1, kind: input, shape index: {}]   ;;  %s386_s2 = inlined_call_operand.vmem [shape: f32[2,1,20], index: 2, kind: input, shape index: {}]   ;;  %s387_s3 = inlined_call_operand.hbm [shape: f32[1], index: 3, kind: output, shape index: {}]  }
   0x1   :  { %v16_v0 = vld [vmem:[%s385_s1] sm:$0xff]  ;;  %v17_v1 = vld [vmem:[%s385_s1 + $0x8] sm:$0xff]  ;;  %293 = vmatprep.subr.bf16.mxu0 %v320_v2  ;;  %296 = vmatprep.subr.bf16.mxu1 %v320_v2 }
   0x2   :  { %v294_v3 = vpack.c.bf16 %v17_v1, %v16_v0  ;;  %281 = vmatprep.mubr.msk.f32.mxu0 %vm321_vm0, %v322_v4  ;;  %290 = vmatprep.mubr.msk.f32.mxu1 %vm321_vm0, %v322_v4 }
   0x3   :  { %8 = vsyncpa [#allocation3], 0  ;;  %v18_v5 = vld [vmem:[%s385_s1 + $0x10] sm:$0xf]  ;;  %vm36_vm1 = vcmask 1043456   ;;  %vm32_vm2 = vcmask 162816  }
   0x4   :  { %295 = vmatpush3.bf16.msra.mxu0 %v294_v3  ;;  %v15_v6 = vld [vmem:[%s384_s0] sm:$0x3]  ;;  %v256_v7 = vld [vmem:[%s385_s1 + $0x18] sm:$0xff]  ;;  %v258_v10 = vld [vmem:[%s385_s1 + $0x28] sm:$0xf]  ;;  %vm193_vm3 = vcmask 156672  }
   0x5   :  { %279 = vmatprep.subr.mxu0 %v322_v4  ;;  %v257_v8 = vld [vmem:[%s385_s1 + $0x20] sm:$0xff]  ;;  %v323_v35 = vmov 0   ;;  %vm230_vm7 = vcmask 1024   ;;  %s308_s4 = scalar_lea.hbm %s387_s3, 16 }
   0x6   :  { %v297_v9 = vpack.c.bf16 %v257_v8, %v256_v7  ;;  %v260_v11 = vld [vmem:[%s386_s2] ss:$0 sm:$0xff]  ;;  %v263_v16 = vld [vmem:[%s386_s2 + $0x1] ss:$0 sm:$0xff]  ;;  %p309_p0 = scmp.ne.s32.totalorder %s387_s3, %s308_s4  ;;  %p312_p1 = scmp.lt.u32.totalorder %s308_s4, %s387_s3 }
   0x8   :  { %280 = vmatpush3.msk.msra.mxu0 %vm36_vm1, %v18_v5  ;;  %298 = vmatpush3.bf16.msra.mxu1 %v297_v9  ;;  %p314_p2 = pnand %p312_p1, %p309_p0 }
   0x9   :  { %282 = vmatmul.mubr.msk.f32.vlgmr.msra.gmra.mrb[0].mxu0 %vm32_vm2, %v15_v6  ;;  %288 = vmatprep.subr.mxu1 %v322_v4 }
   0xc   :  { %289 = vmatpush3.msk.msra.mxu1 %vm36_vm1, %v258_v10 }
  0xdc   :  { %v106_v12 = vpop.f32.mrb[0].mxu0 }
  0xdd   :  { %v107_v13 = vadd.f32 %v260_v11, %v106_v12  ;;  %v283_v14 = vpop.f32.mrb[1].mxu0 }
  0xdf   :  { %v110_v15 = vmax.f32 %v107_v13, 0.0 }
  0xe1   :  { %291 = vmatmul.mubr.msk.f32.vlgmr.msra.gmra.mrb[0].mxu1 %vm32_vm2, %v110_v15 }
 0x1b4   :  { %v189_v17 = vpop.f32.mrb[0].mxu1 }
 0x1b5   :  { %v190_v18 = vadd.f32 %v263_v16, %v189_v17  ;;  %v292_v19 = vpop.f32.mrb[1].mxu1 }
 0x1b7   :  { %v197_v20 = vand.u32 2147483647, %v190_v18  ;;  %v194_v22 = vsel %vm193_vm3, %v190_v18, 0.0 }
 0x1b9   :  { %v198_v21 = vsel %vm193_vm3, %v197_v20, 0.0 }
 0x1ba   :  { %199 = vadd.xlane.f32.xlu0 %v198_v21 }
 0x1be   :  { %195 = vadd.xlane.f32.xlu0 %v194_v22 }
 0x247   :  { %v200_v23 = vpop.xlane.xlu0 %199 }
 0x248   :  { %v201_v24 = vrot.slane %v200_v23, 4 }
 0x24a   :  { %v202_v25 = vadd.f32 %v201_v24, %v200_v23 }
 0x24b   :  { %v196_v46 = vpop.xlane.xlu0 %195 }
 0x24c   :  { %v203_v26 = vrot.slane %v202_v25, 2 }
 0x24e   :  { %v204_v27 = vadd.f32 %v203_v26, %v202_v25 }
 0x250   :  { %v205_v28 = vrot.slane %v204_v27, 1 }
 0x252   :  { %v206_v29 = vadd.f32 %v205_v28, %v204_v27 }
 0x254   :  { %299 = vpush %v206_v29 }
 0x285   :  { %s300_s1 = spop %299 }
 0x286   :  { %v208_v30 = vstv %s300_s1 }
 0x287   :  { %v210_v31 = vshra.s32 %v208_v30, 23  ;;  %v213_v32 = vand.u32 8388607, %v208_v30 }
 0x289   :  { %v211_v33 = vand.u32 255, %v210_v31  ;;  %vm214_vm4 = vcmp.ne.s32.totalorder %v213_v32, 0 }
 0x28a   :  { %v215_v36 = vsel %vm214_vm4, 1, %v323_v35 }
 0x28b   :  { %v266_v34 = vadd.s32 4294967169, %v211_v33 }
 0x28d   :  { %v216_v37 = vadd.s32 %v266_v34, %v215_v36 }
 0x28f   :  { %vm217_vm5 = vcmp.gt.s32.totalorder %v216_v37, 0 }
 0x290   :  { %v218_v38 = vsel %vm217_vm5, %v216_v37, 0 }
 0x291   :  { %vm219_vm6 = vcmp.lt.s32.totalorder %v218_v38, 64 }
 0x292   :  { %v220_v39 = vsel %vm219_vm6, %v218_v38, 64 }
 0x293   :  { %v221_v40 = vsub.s32 %v218_v38, %v220_v39  ;;  %v222_v41 = vsub.s32 127, %v220_v39 }
 0x295   :  { %v225_v42 = vsub.s32 127, %v221_v40  ;;  %v223_v43 = vshll.u32 %v222_v41, 23 }
 0x297   :  { %v226_v44 = vshll.u32 %v225_v42, 23 }
 0x299   :  { %v228_v45 = vmul.f32 %v226_v44, %v223_v43 }
 0x29b   :  { %v229_v47 = vmul.f32 %v228_v45, %v196_v46 }
 0x29d   :  { %v231_v48 = vsel %vm230_vm7, %v229_v47, 0.0 }
 0x29e   :  { %232 = vadd.xlane.f32.xlu1 %v231_v48 }
 0x32b   :  { %v233_v49 = vpop.xlane.xlu1 %232 }
 0x32c   :  { %v234_v50 = vrot.slane %v233_v49, 4 }
 0x32e   :  { %v235_v51 = vadd.f32 %v234_v50, %v233_v49 }
 0x330   :  { %v236_v52 = vrot.slane %v235_v51, 2 }
 0x332   :  { %v237_v53 = vadd.f32 %v236_v52, %v235_v51 }
 0x334   :  { %v238_v54 = vrot.slane %v237_v53, 1 }
 0x336   :  { %v239_v55 = vadd.f32 %v238_v54, %v237_v53 }
 0x338   :  { %301 = vpush %v239_v55 }
 0x369   :  { %s302_s2 = spop %301 }
 0x36a   :  { %242 = sst [smem:[#allocation2]] %s302_s2 }
 0x36b   :  { %317 = shalt.err (!%p314_p2)
}
 0x36c   :  { %s324_s9 = smov [#allocation2]  }
 0x36d   :  { %250 = dma.smem_to_hbm %s324_s9, 16, %s387_s3, [#allocation3]  }
 0x36e   :  { %318 = dma.done.wait [#allocation3], 16  }
 0x36f   :  { %319 = vsyncadd [#allocation3], 4294967280 }
 0x370   :  { %254 = sfence }
 0x371   :  { %255 = vsyncpa [#allocation3], 1 }

</bundles_post_ra>
